<compile_context>
chip_gen: v5e
topology: v5e:2x2
jax: 0.10.0
libtpu: 0.0.40
codegen_flags: <defaults>
</compile_context>

<pallas_src>
import functools
import math

import jax
import jax.numpy as jnp
from jax.experimental import pallas as pl
from jax.experimental.pallas import tpu as pltpu

_EPS = 1e-5
_VMEM_LIMIT = 32 * 1024 * 1024


# ----------------------------------------------------------------------------
# Kernels
# ----------------------------------------------------------------------------
def _mlp_kernel(x_ref, w1, b1, w2, b2, w3, b3, w4, b4, o_ref):
    """Fused fc1..fc4 + ReLU + 2-class log_softmax (no BatchNorm).

    One grid step processes a (tb, dim) batch tile; weights/biases are
    VMEM-resident (constant index maps)."""
    f32 = jnp.float32
    h = jnp.dot(x_ref[...], w1[...], preferred_element_type=f32) + b1[...]
    h = jnp.maximum(h, 0.0)
    h = jnp.dot(h, w2[...], preferred_element_type=f32) + b2[...]
    h = jnp.maximum(h, 0.0)
    h = jnp.dot(h, w3[...], preferred_element_type=f32) + b3[...]
    h = jnp.maximum(h, 0.0)
    logits = jnp.dot(h, w4[...], preferred_element_type=f32) + b4[...]

    # Closed-form 2-class log_softmax: pure VPU/EUP, no cross-lane reduction.
    z0 = logits[:, 0:1]
    z1 = logits[:, 1:2]
    m = jnp.maximum(z0, z1)
    lse = m + jnp.log(jnp.exp(z0 - m) + jnp.exp(z1 - m))
    o_ref[...] = (logits - lse).astype(o_ref.dtype)


def _bn_stage_kernel(stage, batch, tb,
                     x_ref, w1, w2, w3, w4, b4,
                     m1, s1, g1, t1, m2, s2, g2, t2, m3, s3, g3, t3,
                     o_ref):
    """One pass of the BatchNorm path.

    stage 1/2/3: recompute the forward up to layer `stage`'s pre-activations
      and accumulate their masked per-feature sum / sum-of-squares into a
      resident (2, f) output block ("arbitrary" batch-tile grid).
    stage 4: full forward with all statistics known; writes (tb, 2)
      log-softmax ("parallel" batch-tile grid).

    fc1-fc3 biases are omitted: they cancel under BN mean subtraction.
    """
    f32 = jnp.float32
    i = pl.program_id(0)

    def bn_relu(h, m, s, g, t):
        return jnp.maximum((h - m[...]) * s[...] * g[...] + t[...], 0.0)

    h = jnp.dot(x_ref[...], w1[...], preferred_element_type=f32)
    if stage >= 2:
        h = jnp.dot(bn_relu(h, m1, s1, g1, t1), w2[...],
                    preferred_element_type=f32)
    if stage >= 3:
        h = jnp.dot(bn_relu(h, m2, s2, g2, t2), w3[...],
                    preferred_element_type=f32)

    if stage == 4:
        logits = jnp.dot(bn_relu(h, m3, s3, g3, t3), w4[...],
                         preferred_element_type=f32) + b4[...]
        z0 = logits[:, 0:1]
        z1 = logits[:, 1:2]
        mmax = jnp.maximum(z0, z1)
        lse = mmax + jnp.log(jnp.exp(z0 - mmax) + jnp.exp(z1 - mmax))
        o_ref[...] = (logits - lse).astype(o_ref.dtype)
    else:
        # Mask rows past the true batch size (dead-row padding) so they never
        # enter the statistics, then accumulate into the resident (2, f) block.
        row = jax.lax.broadcasted_iota(jnp.int32, h.shape, 0) + i * tb
        hm = jnp.where(row < batch, h, 0.0)
        tile_stats = jnp.concatenate(
            [jnp.sum(hm, axis=0, keepdims=True),
             jnp.sum(hm * hm, axis=0, keepdims=True)], axis=0)

        @pl.when(i == 0)
        def _():
            o_ref[...] = jnp.zeros_like(o_ref)

        o_ref[...] += tile_stats


# ----------------------------------------------------------------------------
# Wrapper
# ----------------------------------------------------------------------------
def _choose_tile(batch, batch_tile):
    """Batch tile: multiple of 8, <= batch_tile, minimal dead-row padding."""
    bt8 = (batch + 7) // 8 * 8
    if bt8 <= batch_tile:
        return bt8
    num_tiles = -(-batch // batch_tile)          # ceil
    tb = -(-batch // num_tiles)                  # balanced tile
    return (tb + 7) // 8 * 8


def net_forward(x, params, *, use_bn=False, batch_tile=2048):
    """Full Net forward pass as fused, batch-tiled Pallas TPU kernel(s)."""
    (w1, b1, w2, b2, w3, b3, w4, b4, g1, t1, g2, t2, g3, t3) = (
        jnp.asarray(p, jnp.float32) for p in params)
    f32 = jnp.float32
    x = x.astype(f32)
    batch, dim = x.shape

    tb = _choose_tile(batch, batch_tile)
    num_tiles = -(-batch // tb)
    batch_p = tb * num_tiles
    xp = x if batch_p == batch else jnp.pad(x, ((0, batch_p - batch), (0, 0)))

    def resident(a):
        # Constant index map -> block stays VMEM-resident across grid steps.
        return pl.BlockSpec(a.shape, lambda i: (0, 0))

    x_spec = pl.BlockSpec((tb, dim), lambda i: (i, 0))
    out_spec = pl.BlockSpec((tb, 2), lambda i: (i, 0))
    par_params = pltpu.CompilerParams(
        dimension_semantics=("parallel",), vmem_limit_bytes=_VMEM_LIMIT)
    arb_params = pltpu.CompilerParams(
        dimension_semantics=("arbitrary",), vmem_limit_bytes=_VMEM_LIMIT)

    if not use_bn:
        inputs = (xp, w1, b1, w2, b2, w3, b3, w4, b4)
        out = pl.pallas_call(
            _mlp_kernel,
            out_shape=jax.ShapeDtypeStruct((batch_p, 2), f32),
            grid=(num_tiles,),
            in_specs=[x_spec] + [resident(a) for a in inputs[1:]],
            out_specs=out_spec,
            compiler_params=par_params,
        )(*inputs)
        return out[:batch]

    # ---- BatchNorm path: layer-by-layer two-pass full-batch statistics. ----
    widths = (w1.shape[1], w2.shape[1], w3.shape[1])  # 50, 100, 50
    means = [jnp.zeros((1, f), f32) for f in widths]
    invs = [jnp.ones((1, f), f32) for f in widths]
    gammas = (g1, g2, g3)
    betas = (t1, t2, t3)

    def stats_args():
        out = []
        for k in range(3):
            out += [means[k], invs[k], gammas[k], betas[k]]
        return tuple(out)

    for stage in (1, 2, 3):
        f = widths[stage - 1]
        inputs = (xp, w1, w2, w3, w4, b4) + stats_args()
        stats = pl.pallas_call(
            functools.partial(_bn_stage_kernel, stage, batch, tb),
            out_shape=jax.ShapeDtypeStruct((2, f), f32),
            grid=(num_tiles,),
            in_specs=[x_spec] + [resident(a) for a in inputs[1:]],
            out_specs=pl.BlockSpec((2, f), lambda i: (0, 0)),
            compiler_params=arb_params,
        )(*inputs)
        mean = stats[0:1, :] / batch
        var = stats[1:2, :] / batch - mean * mean
        means[stage - 1] = mean
        invs[stage - 1] = jax.lax.rsqrt(var + _EPS)

    inputs = (xp, w1, w2, w3, w4, b4) + stats_args()
    out = pl.pallas_call(
        functools.partial(_bn_stage_kernel, 4, batch, tb),
        out_shape=jax.ShapeDtypeStruct((batch_p, 2), f32),
        grid=(num_tiles,),
        in_specs=[x_spec] + [resident(a) for a in inputs[1:]],
        out_specs=out_spec,
        compiler_params=par_params,
    )(*inputs)
    return out[:batch]


# ----------------------------------------------------------------------------
# Params / reference
# ----------------------------------------------------------------------------
def init_params(key, dim=10):
    """nn.Linear-style init (uniform +/- 1/sqrt(fan_in)); weights as (in, out),
    biases as (1, out); BatchNorm gamma=1, beta=0."""
    dims = [(dim, 50), (50, 100), (100, 50), (50, 2)]
    params = []
    keys = jax.random.split(key, 2 * len(dims))
    for i, (fin, fout) in enumerate(dims):
        bound = 1.0 / math.sqrt(fin)
        w = jax.random.uniform(keys[2 * i], (fin, fout), jnp.float32, -bound, bound)
        b = jax.random.uniform(keys[2 * i + 1], (1, fout), jnp.float32, -bound, bound)
        params += [w, b]
    for width in (50, 100, 50):
        params += [jnp.ones((1, width), jnp.float32),
                   jnp.zeros((1, width), jnp.float32)]
    return tuple(params)


def reference_forward(x, params, use_bn=False):
    """Plain-JAX reference of the PyTorch forward pass."""
    (w1, b1, w2, b2, w3, b3, w4, b4, g1, t1, g2, t2, g3, t3) = params

    def bn(h, g, b):
        mean = jnp.mean(h, axis=0, keepdims=True)
        var = jnp.mean((h - mean) ** 2, axis=0, keepdims=True)
        return (h - mean) / jnp.sqrt(var + _EPS) * g + b

    h = x @ w1 + b1
    if use_bn:
        h = bn(h, g1, t1)
    h = jnp.maximum(h, 0.0)
    h = h @ w2 + b2
    if use_bn:
        h = bn(h, g2, t2)
    h = jnp.maximum(h, 0.0)
    h = h @ w3 + b3
    if use_bn:
        h = bn(h, g3, t3)
    h = jnp.maximum(h, 0.0)
    z = h @ w4 + b4
    return z - jax.scipy.special.logsumexp(z, axis=-1, keepdims=True)


if __name__ == "__main__":
    key = jax.random.PRNGKey(0)
    k_param, k_x = jax.random.split(key)
    dim = 10
    params = init_params(k_param, dim=dim)

    ok = True
    # batch=8: single small tile; batch=300: non-multiple-of-8 batch exercising
    # dead-row padding + masked BN statistics.
    for batch in (8, 300):
        x = jax.random.normal(jax.random.fold_in(k_x, batch), (batch, dim),
                              jnp.float32)
        for use_bn in (False, True):   # args.batch_norm == 'false' / 'true'
            out = jax.block_until_ready(net_forward(x, params, use_bn=use_bn))
            ref = reference_forward(x, params, use_bn=use_bn)
            if out.shape != (batch, 2) or not jnp.allclose(out, ref,
                                                           atol=5e-4, rtol=5e-4):
                ok = False

    if ok:
        print("KERNEL_OK")
</pallas_src>

<mosaic_0001>
module attributes {stable_mosaic.version = 11 : i64} {
  func.func @_mlp_kernel(%arg0: i32, %arg1: memref<8x10xf32, #tpu.memory_space<vmem>>, %arg2: memref<10x50xf32, #tpu.memory_space<vmem>>, %arg3: memref<1x50xf32, #tpu.memory_space<vmem>>, %arg4: memref<50x100xf32, #tpu.memory_space<vmem>>, %arg5: memref<1x100xf32, #tpu.memory_space<vmem>>, %arg6: memref<100x50xf32, #tpu.memory_space<vmem>>, %arg7: memref<1x50xf32, #tpu.memory_space<vmem>>, %arg8: memref<50x2xf32, #tpu.memory_space<vmem>>, %arg9: memref<1x2xf32, #tpu.memory_space<vmem>>, %arg10: memref<8x2xf32, #tpu.memory_space<vmem>>) attributes {dimension_semantics = [#tpu.dimension_semantics<parallel>], iteration_bounds = array<i64: 1>, scalar_prefetch = 0 : i64, scratch_operands = 0 : i64, tpu.core_type = #tpu.core_type<tc>, window_params = [{transform_indices = @transform_0, window_bounds = array<i64: 8, 10>}, {pipeline_mode = #tpu.pipeline_mode<synchronous>, transform_indices = @transform_1, window_bounds = array<i64: 10, 50>}, {pipeline_mode = #tpu.pipeline_mode<synchronous>, transform_indices = @transform_2, window_bounds = array<i64: 1, 50>}, {pipeline_mode = #tpu.pipeline_mode<synchronous>, transform_indices = @transform_3, window_bounds = array<i64: 50, 100>}, {pipeline_mode = #tpu.pipeline_mode<synchronous>, transform_indices = @transform_4, window_bounds = array<i64: 1, 100>}, {pipeline_mode = #tpu.pipeline_mode<synchronous>, transform_indices = @transform_5, window_bounds = array<i64: 100, 50>}, {pipeline_mode = #tpu.pipeline_mode<synchronous>, transform_indices = @transform_6, window_bounds = array<i64: 1, 50>}, {pipeline_mode = #tpu.pipeline_mode<synchronous>, transform_indices = @transform_7, window_bounds = array<i64: 50, 2>}, {pipeline_mode = #tpu.pipeline_mode<synchronous>, transform_indices = @transform_8, window_bounds = array<i64: 1, 2>}, {transform_indices = @transform_9, window_bounds = array<i64: 8, 2>}]} {
    %c0 = arith.constant 0 : index
    %c0_0 = arith.constant 0 : index
    %0 = vector.load %arg1[%c0, %c0_0] : memref<8x10xf32, #tpu.memory_space<vmem>>, vector<8x10xf32>
    %c0_1 = arith.constant 0 : index
    %c0_2 = arith.constant 0 : index
    %1 = vector.load %arg2[%c0_1, %c0_2] : memref<10x50xf32, #tpu.memory_space<vmem>>, vector<10x50xf32>
    %cst = arith.constant dense<0.000000e+00> : vector<8x50xf32>
    %2 = tpu.matmul %0, %1, %cst {dimension_numbers = #tpu.dot_dimension_numbers<[1], [0], [0], [1], [0, 0, 1, 1], [], []>} : vector<8x10xf32>, vector<10x50xf32>, vector<8x50xf32> -> vector<8x50xf32>
    %c0_3 = arith.constant 0 : index
    %c0_4 = arith.constant 0 : index
    %3 = vector.load %arg3[%c0_3, %c0_4] : memref<1x50xf32, #tpu.memory_space<vmem>>, vector<1x50xf32>
    %4 = vector.broadcast %3 : vector<1x50xf32> to vector<8x50xf32>
    %5 = arith.addf %2, %4 : vector<8x50xf32>
    %cst_5 = arith.constant 0.000000e+00 : f32
    %6 = vector.broadcast %cst_5 : f32 to vector<8x50xf32>
    %7 = arith.maximumf %5, %6 : vector<8x50xf32>
    %c0_6 = arith.constant 0 : index
    %c0_7 = arith.constant 0 : index
    %8 = vector.load %arg4[%c0_6, %c0_7] : memref<50x100xf32, #tpu.memory_space<vmem>>, vector<50x100xf32>
    %cst_8 = arith.constant dense<0.000000e+00> : vector<8x100xf32>
    %9 = tpu.matmul %7, %8, %cst_8 {dimension_numbers = #tpu.dot_dimension_numbers<[1], [0], [0], [1], [0, 0, 1, 1], [], []>} : vector<8x50xf32>, vector<50x100xf32>, vector<8x100xf32> -> vector<8x100xf32>
    %c0_9 = arith.constant 0 : index
    %c0_10 = arith.constant 0 : index
    %10 = vector.load %arg5[%c0_9, %c0_10] : memref<1x100xf32, #tpu.memory_space<vmem>>, vector<1x100xf32>
    %11 = vector.broadcast %10 : vector<1x100xf32> to vector<8x100xf32>
    %12 = arith.addf %9, %11 : vector<8x100xf32>
    %cst_11 = arith.constant 0.000000e+00 : f32
    %13 = vector.broadcast %cst_11 : f32 to vector<8x100xf32>
    %14 = arith.maximumf %12, %13 : vector<8x100xf32>
    %c0_12 = arith.constant 0 : index
    %c0_13 = arith.constant 0 : index
    %15 = vector.load %arg6[%c0_12, %c0_13] : memref<100x50xf32, #tpu.memory_space<vmem>>, vector<100x50xf32>
    %cst_14 = arith.constant dense<0.000000e+00> : vector<8x50xf32>
    %16 = tpu.matmul %14, %15, %cst_14 {dimension_numbers = #tpu.dot_dimension_numbers<[1], [0], [0], [1], [0, 0, 1, 1], [], []>} : vector<8x100xf32>, vector<100x50xf32>, vector<8x50xf32> -> vector<8x50xf32>
    %c0_15 = arith.constant 0 : index
    %c0_16 = arith.constant 0 : index
    %17 = vector.load %arg7[%c0_15, %c0_16] : memref<1x50xf32, #tpu.memory_space<vmem>>, vector<1x50xf32>
    %18 = vector.broadcast %17 : vector<1x50xf32> to vector<8x50xf32>
    %19 = arith.addf %16, %18 : vector<8x50xf32>
    %cst_17 = arith.constant 0.000000e+00 : f32
    %20 = vector.broadcast %cst_17 : f32 to vector<8x50xf32>
    %21 = arith.maximumf %19, %20 : vector<8x50xf32>
    %c0_18 = arith.constant 0 : index
    %c0_19 = arith.constant 0 : index
    %22 = vector.load %arg8[%c0_18, %c0_19] : memref<50x2xf32, #tpu.memory_space<vmem>>, vector<50x2xf32>
    %cst_20 = arith.constant dense<0.000000e+00> : vector<8x2xf32>
    %23 = tpu.matmul %21, %22, %cst_20 {dimension_numbers = #tpu.dot_dimension_numbers<[1], [0], [0], [1], [0, 0, 1, 1], [], []>} : vector<8x50xf32>, vector<50x2xf32>, vector<8x2xf32> -> vector<8x2xf32>
    %c0_21 = arith.constant 0 : index
    %c0_22 = arith.constant 0 : index
    %24 = vector.load %arg9[%c0_21, %c0_22] : memref<1x2xf32, #tpu.memory_space<vmem>>, vector<1x2xf32>
    %25 = vector.broadcast %24 : vector<1x2xf32> to vector<8x2xf32>
    %26 = arith.addf %23, %25 : vector<8x2xf32>
    %27 = vector.extract_strided_slice %26 {offsets = [0, 0], sizes = [8, 1], strides = [1, 1]} : vector<8x2xf32> to vector<8x1xf32>
    %28 = vector.extract_strided_slice %26 {offsets = [0, 1], sizes = [8, 1], strides = [1, 1]} : vector<8x2xf32> to vector<8x1xf32>
    %29 = arith.maximumf %27, %28 : vector<8x1xf32>
    %30 = arith.subf %27, %29 : vector<8x1xf32>
    %31 = math.exp %30 : vector<8x1xf32>
    %32 = arith.subf %28, %29 : vector<8x1xf32>
    %33 = math.exp %32 : vector<8x1xf32>
    %34 = arith.addf %31, %33 : vector<8x1xf32>
    %35 = math.log %34 : vector<8x1xf32>
    %36 = arith.addf %29, %35 : vector<8x1xf32>
    %37 = vector.broadcast %36 : vector<8x1xf32> to vector<8x2xf32>
    %38 = arith.subf %26, %37 : vector<8x2xf32>
    %c0_23 = arith.constant 0 : index
    %c0_24 = arith.constant 0 : index
    %39 = vector.load %arg10[%c0_23, %c0_24] : memref<8x2xf32, #tpu.memory_space<vmem>>, vector<8x2xf32>
    tpu.vector_store %arg10[%c0_23, %c0_24], %38 {strides = array<i32>} : memref<8x2xf32, #tpu.memory_space<vmem>>, vector<8x2xf32>,
    return
  }
  func.func @transform_0(%arg0: i32) -> (i32, i32) {
    %c0_i32 = arith.constant 0 : i32
    %c0_i32_0 = arith.constant 0 : i32
    return %arg0, %c0_i32 : i32, i32
  }
  func.func @transform_1(%arg0: i32) -> (i32, i32) {
    %c0_i32 = arith.constant 0 : i32
    %c0_i32_0 = arith.constant 0 : i32
    %c0_i32_1 = arith.constant 0 : i32
    return %c0_i32, %c0_i32_0 : i32, i32
  }
  func.func @transform_2(%arg0: i32) -> (i32, i32) {
    %c0_i32 = arith.constant 0 : i32
    %c0_i32_0 = arith.constant 0 : i32
    %c0_i32_1 = arith.constant 0 : i32
    return %c0_i32, %c0_i32_0 : i32, i32
  }
  func.func @transform_3(%arg0: i32) -> (i32, i32) {
    %c0_i32 = arith.constant 0 : i32
    %c0_i32_0 = arith.constant 0 : i32
    %c0_i32_1 = arith.constant 0 : i32
    return %c0_i32, %c0_i32_0 : i32, i32
  }
  func.func @transform_4(%arg0: i32) -> (i32, i32) {
    %c0_i32 = arith.constant 0 : i32
    %c0_i32_0 = arith.constant 0 : i32
    %c0_i32_1 = arith.constant 0 : i32
    return %c0_i32, %c0_i32_0 : i32, i32
  }
  func.func @transform_5(%arg0: i32) -> (i32, i32) {
    %c0_i32 = arith.constant 0 : i32
    %c0_i32_0 = arith.constant 0 : i32
    %c0_i32_1 = arith.constant 0 : i32
    return %c0_i32, %c0_i32_0 : i32, i32
  }
  func.func @transform_6(%arg0: i32) -> (i32, i32) {
    %c0_i32 = arith.constant 0 : i32
    %c0_i32_0 = arith.constant 0 : i32
    %c0_i32_1 = arith.constant 0 : i32
    return %c0_i32, %c0_i32_0 : i32, i32
  }
  func.func @transform_7(%arg0: i32) -> (i32, i32) {
    %c0_i32 = arith.constant 0 : i32
    %c0_i32_0 = arith.constant 0 : i32
    %c0_i32_1 = arith.constant 0 : i32
    return %c0_i32, %c0_i32_0 : i32, i32
  }
  func.func @transform_8(%arg0: i32) -> (i32, i32) {
    %c0_i32 = arith.constant 0 : i32
    %c0_i32_0 = arith.constant 0 : i32
    %c0_i32_1 = arith.constant 0 : i32
    return %c0_i32, %c0_i32_0 : i32, i32
  }
  func.func @transform_9(%arg0: i32) -> (i32, i32) {
    %c0_i32 = arith.constant 0 : i32
    %c0_i32_0 = arith.constant 0 : i32
    return %arg0, %c0_i32 : i32, i32
  }
}

</mosaic_0001>

<bundles_post_ra>
// kernel: tpu_custom_call.1
= control target key start
LH: loop header
LB: loop body
LE: loop exit
PB: predicated region body
PF: predicated region fallthrough
CT: control target
= control target key end

     0   :  { %vm43_vm0 = vcmask 1041408   ;;  %vm39_vm1 = vcmask 80896   ;;  %vm128_vm2 = vcmask 1043456   ;;  %vm79_vm3 = vcmask 408576   ;;  %s248_s24 = smov 127   ;;  %s411_s1 = inlined_call_operand.vmem [shape: f32[10,50], index: 1, kind: input, shape index: {}]   ;;  %s412_s0 = inlined_call_operand.vmem [shape: f32[8,10], index: 0, kind: input, shape index: {}]   ;;  %s413_s3 = inlined_call_operand.vmem [shape: f32[50,100], index: 3, kind: input, shape index: {}]   ;;  %s414_s2 = inlined_call_operand.vmem [shape: f32[1,50], index: 2, kind: input, shape index: {}]   ;;  %s415_s4 = inlined_call_operand.vmem [shape: f32[1,100], index: 4, kind: input, shape index: {}]   ;;  %s416_s5 = inlined_call_operand.vmem [shape: f32[100,50], index: 5, kind: input, shape index: {}]   ;;  %s417_s6 = inlined_call_operand.vmem [shape: f32[1,50], index: 6, kind: input, shape index: {}]   ;;  %s418_s7 = inlined_call_operand.vmem [shape: f32[50,2], index: 7, kind: input, shape index: {}]   ;;  %s419_s8 = inlined_call_operand.vmem [shape: f32[1,2], index: 8, kind: input, shape index: {}]   ;;  %s420_s9 = inlined_call_operand.vmem [shape: f32[8,2], index: 9, kind: output, shape index: {}]  }
   0x1   :  { %v34_v0 = vld [vmem:[%s411_s1 + $0x8] sm:$0x3]  ;;  %v33_v1 = vld [vmem:[%s411_s1] sm:$0xff]  ;;  %v74_v3 = vld [vmem:[%s413_s3 + $0x30] sm:$0x3]  ;;  %vm124_vm4 = vcmask 818176  }
   0x2   :  { %225 = vmatpush.msk.msra.mxu0 %vm43_vm0, %v34_v0  ;;  %v32_v2 = vld [vmem:[%s412_s0] sm:$0xff]  ;;  %v73_v4 = vld [vmem:[%s413_s3 + $0x28] sm:$0xff]  ;;  %227 = vmatpush.msk.msra.mxu1 %vm43_vm0, %v74_v3  ;;  %v71_v6 = vld [vmem:[%s413_s3 + $0x18] sm:$0xff]  ;;  %v250_v51 = vmov 0   ;;  %vm219_vm5 = vcmask 15360  }
   0x3   :  { %v72_v5 = vld [vmem:[%s413_s3 + $0x20] sm:$0xff]  ;;  %v70_v7 = vld [vmem:[%s413_s3 + $0x10] sm:$0xff]  ;;  %v69_v8 = vld [vmem:[%s413_s3 + $0x8] sm:$0xff]  ;;  %236 = vset.pattern.permute.xlu1 %v250_v51  ;;  %237 = vset.pattern.permute.xlu0 %v250_v51 }
   0x4   :  { %62 = vmatpush.msra.mxu0 %v33_v1  ;;  %96 = vmatpush.msra.mxu1 %v73_v4  ;;  %v68_v9 = vld [vmem:[%s413_s3] sm:$0xff]  ;;  %v118_v11 = vld [vmem:[%s416_s5 + $0x58] sm:$0xff]  ;;  %v117_v12 = vld [vmem:[%s416_s5 + $0x50] sm:$0xff] }
   0x5   :  { %226 = vmatmul.msk.f32.vlgmr.msra.gmra.mxu0 %vm39_vm1, %v32_v2  ;;  %v119_v10 = vld [vmem:[%s416_s5 + $0x60] sm:$0xf]  ;;  %v116_v13 = vld [vmem:[%s416_s5 + $0x48] sm:$0xff]  ;;  %v114_v15 = vld [vmem:[%s416_s5 + $0x38] sm:$0xff] }
   0x6   :  { %97 = vmatpush.msra.mxu1 %v72_v5  ;;  %229 = vmatpush.msk.msra.mxu2 %vm128_vm2, %v119_v10  ;;  %v115_v14 = vld [vmem:[%s416_s5 + $0x40] sm:$0xff]  ;;  %v113_v16 = vld [vmem:[%s416_s5 + $0x30] sm:$0xff]  ;;  %v112_v17 = vld [vmem:[%s416_s5 + $0x28] sm:$0xff] }
   0x7   :  { %v111_v18 = vld [vmem:[%s416_s5 + $0x20] sm:$0xff]  ;;  %v110_v19 = vld [vmem:[%s416_s5 + $0x18] sm:$0xff]  ;;  %v109_v24 = vld [vmem:[%s416_s5 + $0x10] sm:$0xff] }
   0x8   :  { %98 = vmatpush.msra.mxu1 %v71_v6  ;;  %136 = vmatpush.msra.mxu2 %v118_v11  ;;  %v238_v20 = vld [vmem:[%s414_s2] ss:$0 sm:$0xff]  ;;  %v108_v25 = vld [vmem:[%s416_s5 + $0x8] sm:$0xff]  ;;  %v159_v27 = vld [vmem:[%s418_s7 + $0x30] sm:$0x3] }
   0x9   :  { %v107_v26 = vld [vmem:[%s416_s5] sm:$0xff]  ;;  %v158_v28 = vld [vmem:[%s418_s7 + $0x28] sm:$0xff]  ;;  %231 = vmatpush.msk.msra.mxu3 %vm43_vm0, %v159_v27  ;;  %v156_v30 = vld [vmem:[%s418_s7 + $0x18] sm:$0xff] }
   0xa   :  { %99 = vmatpush.msra.mxu1 %v70_v7  ;;  %137 = vmatpush.msra.mxu2 %v117_v12  ;;  %v157_v29 = vld [vmem:[%s418_s7 + $0x20] sm:$0xff]  ;;  %v155_v35 = vld [vmem:[%s418_s7 + $0x10] sm:$0xff]  ;;  %v154_v36 = vld [vmem:[%s418_s7 + $0x8] sm:$0xff] }
   0xb   :  { %180 = vmatpush.msra.mxu3 %v158_v28  ;;  %v239_v31 = vld [vmem:[%s415_s4] ss:$0 sm:$0xff] }
   0xc   :  { %100 = vmatpush.msra.mxu1 %v69_v8  ;;  %138 = vmatpush.msra.mxu2 %v116_v13  ;;  %v153_v37 = vld [vmem:[%s418_s7] sm:$0xff]  ;;  %s249_s7 = smov 1  }
   0xd   :  { %181 = vmatpush.msra.mxu3 %v157_v29  ;;  %v240_v38 = vld [vmem:[%s417_s6] ss:$0 sm:$0xff] }
   0xe   :  { %101 = vmatpush.msra.mxu1 %v68_v9  ;;  %139 = vmatpush.msra.mxu2 %v115_v14  ;;  %v241_v42 = vld [vmem:[%s419_s8] ss:$0 sm:$0xff] }
   0xf   :  { %182 = vmatpush.msra.mxu3 %v156_v30 }
  0x10   :  { %140 = vmatpush.msra.mxu2 %v114_v15 }
  0x11   :  { %183 = vmatpush.msra.mxu3 %v155_v35 }
  0x12   :  { %141 = vmatpush.msra.mxu2 %v113_v16 }
  0x13   :  { %184 = vmatpush.msra.mxu3 %v154_v36 }
  0x14   :  { %142 = vmatpush.msra.mxu2 %v112_v17 }
  0x15   :  { %185 = vmatpush.msra.mxu3 %v153_v37 }
  0x16   :  { %143 = vmatpush.msra.mxu2 %v111_v18 }
  0x18   :  { %144 = vmatpush.msra.mxu2 %v110_v19 }
  0x1a   :  { %145 = vmatpush.msra.mxu2 %v109_v24 }
  0x1c   :  { %146 = vmatpush.msra.mxu2 %v108_v25 }
  0x1e   :  { %147 = vmatpush.msra.mxu2 %v107_v26 }
  0x82   :  { %v64_v21 = vpop.f32.mrf.mxu0 }
  0x83   :  { %v65_v22 = vadd.f32 %v238_v20, %v64_v21 }
  0x85   :  { %v67_v23 = vmax.f32 %v65_v22, 0.0 }
  0x87   :  { %228 = vmatmul.msk.f32.vlgmr.msra.gmra.mxu1 %vm79_vm3, %v67_v23 }
 0x104   :  { %v103_v32 = vpop.f32.mrf.mxu1 }
 0x105   :  { %v104_v33 = vadd.f32 %v239_v31, %v103_v32 }
 0x107   :  { %v106_v34 = vmax.f32 %v104_v33, 0.0 }
 0x109   :  { %230 = vmatmul.msk.f32.vlgmr.msra.gmra.mxu2 %vm124_vm4, %v106_v34 }
 0x18c   :  { %v149_v39 = vpop.f32.mrf.mxu2 }
 0x18d   :  { %v150_v40 = vadd.f32 %v240_v38, %v149_v39 }
 0x18f   :  { %v152_v41 = vmax.f32 %v150_v40, 0.0 }
 0x191   :  { %232 = vmatmul.msk.f32.vlgmr.msra.gmra.mxu3 %vm79_vm3, %v152_v41 }
 0x214   :  { %v187_v43 = vpop.f32.mrf.mxu3 }
 0x215   :  { %v188_v44 = vadd.f32 %v241_v42, %v187_v43 }
 0x217   :  { %191 = vrot.lane.b32.xlu0 %v188_v44, %s248_s24 }
 0x289   :  { %v192_v45 = vpop.permute.xlu0 %191 }
 0x28a   :  { %v194_v46 = vmax.f32 %v188_v44, %v192_v45 }
 0x28c   :  { %199 = vrot.lane.b32.xlu0 %v194_v46, %s249_s7  ;;  %v195_v52 = vsub.f32 %v188_v44, %v194_v46 }
 0x28e   :  { %v196_v53 = vmul.f32 1.442695, %v195_v52 }
 0x2fe   :  { %v200_v47 = vpop.permute.xlu0 %199 }
 0x2ff   :  { %v202_v48 = vsub.f32 %v188_v44, %v200_v47 }
 0x301   :  { %v203_v49 = vmul.f32 1.442695, %v202_v48 }
 0x303   :  { %242 = vpow2.f32 %v203_v49 }
 0x304   :  { %244 = vpow2.f32 %v196_v53 }
 0x309   :  { %v243_v50 = vpop.eup %242 }
 0x30a   :  { %206 = vrot.lane.b32.xlu1 %v243_v50, %s248_s24  ;;  %v245_v54 = vpop.eup %244 }
 0x37c   :  { %v207_v55 = vpop.permute.xlu1 %206 }
 0x37d   :  { %v209_v56 = vadd.f32 %v245_v54, %v207_v55 }
 0x37f   :  { %246 = vlog2.f32 %v209_v56 }
 0x385   :  { %v247_v57 = vpop.eup %246 }
 0x386   :  { %v211_v58 = vmul.f32 0.6931472, %v247_v57 }
 0x388   :  { %v212_v59 = vadd.f32 %v211_v58, %v194_v46 }
 0x38a   :  { %215 = vperm.xlu1 %236, %v212_v59  }
 0x3fc   :  { %v216_v60 = vpop.permute.xlu1 %215 }
 0x3fd   :  { %v218_v61 = vsub.f32 %v188_v44, %v216_v60 }
 0x3ff   :  { %220 = vst.msk [vmem:[%s420_s9] sm:$0xff] %vm219_vm5, %v218_v61 }

</bundles_post_ra>
